<compile_context>
chip_gen: v5e
topology: v5e:2x2
jax: 0.10.0
libtpu: 0.0.40
codegen_flags: <defaults>
</compile_context>

<pallas_src>
import functools

import jax
import jax.numpy as jnp
from jax.experimental import pallas as pl
from jax.experimental.pallas import tpu as pltpu

_LANE = 128


def _round_up(v, m):
    return ((v + m - 1) // m) * m


def _fwd_diffusion_kernel(slab_ref, pos_ref):
    """Per-tile noise application.

    slab_ref: (8, TN) fp32 lane-dense slab.
        rows 0..2 = x (xyz), 3..5 = centered eps (xyz), 6 = alpha, 7 = sigma.
    pos_ref:  (3, TN) fp32 -> alpha * x + sigma * eps_centered.
    """
    slab = slab_ref[...]
    x = slab[0:3, :]
    eps_c = slab[3:6, :]
    alpha = slab[6:7, :]            # (1, TN) broadcasts over xyz rows
    sigma = slab[7:8, :]
    pos_ref[...] = alpha * x + sigma * eps_c


def _choose_tile(n_lane, tile_n):
    """Large tiles to amortize ~0.35us/step overhead; >=2 steps when cheap."""
    tile_n = _round_up(max(_LANE, min(tile_n, n_lane)), _LANE)
    if n_lane <= tile_n:
        # Single tile covers everything; split in two only if each half stays
        # big enough (>=32K lanes) — lets v7x's 2 TensorCores both work on
        # large inputs without shrinking tiles on small ones.
        half = _round_up(pl.cdiv(n_lane, 2), _LANE)
        return half if half >= 32768 else n_lane
    return tile_n


@functools.partial(jax.jit, static_argnums=(2,),
                   static_argnames=("Tmax", "t_embedding_dim", "tile_n"))
def forward_diffusion(x, batch_idxs, bs, key, *, Tmax=1000,
                      t_embedding_dim=256, tile_n=65536):
    """JAX/Pallas equivalent of ForwardDiffusionModule._forward.

    Args:
      x:          (N, 3) float positions.
      batch_idxs: (N,) int32 graph index per node.
      bs:         number of graphs in the batch (static).
      key:        PRNG key for eps / t sampling.
    Returns dict with 'pos', 'noise_target', 'conditioning', 'sampled_t'.
    """
    N, D = x.shape
    assert D == 3
    half_dim = t_embedding_dim // 2

    k_eps, k_t = jax.random.split(key)
    eps = jax.random.normal(k_eps, (N, D), dtype=jnp.float32)
    # center_pos: remove the noise center of mass.
    # TODO(synk): reference center_pos(eps) receives no batch index, so this
    # centers over the whole batch; switch to a per-graph segment mean if the
    # reference implementation actually centers per graph.
    eps_c = eps - jnp.mean(eps, axis=0, keepdims=True)

    t = jax.random.randint(k_t, (bs, 1), 0, Tmax, dtype=jnp.int32)

    # DDPM noise scheduler: linear betas, alpha = sqrt(cumprod(1-beta)),
    # sigma = sqrt(1 - cumprod(1-beta)).
    betas = jnp.linspace(1e-4, 0.02, Tmax, dtype=jnp.float32)
    alphas_cumprod = jnp.cumprod(1.0 - betas)
    ac_t = alphas_cumprod[t[:, 0]]                               # (bs,)
    alpha_g = jnp.sqrt(ac_t)
    sigma_g = jnp.sqrt(1.0 - ac_t)

    # graph -> node broadcast (gather glue stays in JAX).
    alpha_n = alpha_g[batch_idxs]                                # (N,)
    sigma_n = sigma_g[batch_idxs]                                # (N,)

    # Sinusoidal time embedding: computed per GRAPH (bs << N), broadcast to
    # nodes via batch_idxs — keeps the N*256 sin/cos out of the hot kernel.
    # TODO(synk): verify positional-embedding convention (half_dim-1
    # denominator, [sin | cos] order) against the reference t_embedder.
    freqs = jnp.exp(
        -jnp.log(10000.0) * jnp.arange(half_dim, dtype=jnp.float32)
        / float(max(half_dim - 1, 1)))                           # (half_dim,)
    args = t.astype(jnp.float32) * freqs[None, :]                # (bs, half_dim)
    emb_g = jnp.concatenate([jnp.sin(args), jnp.cos(args)], axis=-1)
    conditioning = emb_g[batch_idxs]                             # (N, t_embedding_dim)

    # ---- one lane-dense (8, n_pad) input slab -------------------------------
    n_lane = _round_up(N, _LANE)
    tn = _choose_tile(n_lane, tile_n)
    n_pad = _round_up(n_lane, tn)

    slab = jnp.zeros((8, n_pad), jnp.float32)
    slab = slab.at[0:3, :N].set(x.T.astype(jnp.float32))
    slab = slab.at[3:6, :N].set(eps_c.T)
    slab = slab.at[6, :N].set(alpha_n)
    slab = slab.at[7, :N].set(sigma_n)
    # padded lanes: all rows zero -> pos output zero, sliced off below.

    grid = (n_pad // tn,)
    pos_t = pl.pallas_call(
        _fwd_diffusion_kernel,
        out_shape=jax.ShapeDtypeStruct((3, n_pad), jnp.float32),
        grid_spec=pltpu.PrefetchScalarGridSpec(
            num_scalar_prefetch=0,
            grid=grid,
            in_specs=[pl.BlockSpec((8, tn), lambda i: (0, i))],
            out_specs=pl.BlockSpec((3, tn), lambda i: (0, i)),
        ),
        compiler_params=pltpu.CompilerParams(
            # No-op on single-TC v5e/v6e; shards the grid across v7x's 2 TCs.
            dimension_semantics=("parallel",)),
    )(slab)

    # Module interface returns (N, 3); transpose stays inside the jit so XLA
    # fuses it with the un-pad slice.  (Keep lane-dense (3, N) end-to-end if
    # the downstream consumer accepts it.)
    noised_pos = pos_t[:, :N].T                                  # (N, 3)
    noise_target = eps_c                                         # == centered eps
    sampled_t = t[batch_idxs]                                    # (N, 1) int32

    # TODO(synk): labels_conditioned=True branch (nn.Embedding lookup, 0.5
    # cond/uncond masking, concat) not implemented; default config disables it.

    return {
        "pos": noised_pos,
        "noise_target": noise_target,
        "conditioning": conditioning,
        "sampled_t": sampled_t,
    }


if __name__ == "__main__":
    key = jax.random.PRNGKey(0)
    k_x, k_run = jax.random.split(key)

    bs = 2                      # graphs in the batch
    nodes_per_graph = 8
    N = bs * nodes_per_graph    # total atoms/nodes
    t_embedding_dim = 256       # module default

    x = jax.random.normal(k_x, (N, 3), dtype=jnp.float32)
    batch_idxs = jnp.repeat(jnp.arange(bs, dtype=jnp.int32), nodes_per_graph)

    out = forward_diffusion(x, batch_idxs, bs, k_run,
                            Tmax=1000, t_embedding_dim=t_embedding_dim)
    jax.block_until_ready(out)

    # shape checks mirroring the module's asserts
    assert out["pos"].shape == (N, 3)
    assert out["noise_target"].shape == (N, 3)
    assert out["conditioning"].shape == (N, t_embedding_dim)
    assert out["sampled_t"].shape == (N, 1)

    # center_pos semantics: noise target has ~zero center of mass
    com = jnp.abs(jnp.mean(out["noise_target"], axis=0))
    assert bool(jnp.all(com < 1e-5)), com

    # kernel correctness: pos == alpha(t)*x + sigma(t)*noise_target
    betas = jnp.linspace(1e-4, 0.02, 1000, dtype=jnp.float32)
    ac = jnp.cumprod(1.0 - betas)
    t_node = out["sampled_t"][:, 0]
    a = jnp.sqrt(ac[t_node])[:, None]
    s = jnp.sqrt(1.0 - ac[t_node])[:, None]
    ref_pos = a * x + s * out["noise_target"]
    assert bool(jnp.max(jnp.abs(ref_pos - out["pos"])) < 1e-5)

    assert bool(jnp.all(jnp.isfinite(out["pos"])))
    assert bool(jnp.all(jnp.isfinite(out["conditioning"])))

    print("KERNEL_OK")
</pallas_src>

<mosaic_0001>
module attributes {stable_mosaic.version = 11 : i64} {
  func.func @_fwd_diffusion_kernel(%arg0: i32, %arg1: memref<8x128xf32, #tpu.memory_space<vmem>>, %arg2: memref<3x128xf32, #tpu.memory_space<vmem>>) attributes {dimension_semantics = [#tpu.dimension_semantics<parallel>], iteration_bounds = array<i64: 1>, scalar_prefetch = 0 : i64, scratch_operands = 0 : i64, tpu.core_type = #tpu.core_type<tc>, window_params = [{transform_indices = @transform_0, window_bounds = array<i64: 8, 128>}, {transform_indices = @transform_1, window_bounds = array<i64: 3, 128>}]} {
    %c0 = arith.constant 0 : index
    %c0_0 = arith.constant 0 : index
    %0 = vector.load %arg1[%c0, %c0_0] : memref<8x128xf32, #tpu.memory_space<vmem>>, vector<8x128xf32>
    %1 = vector.extract_strided_slice %0 {offsets = [0, 0], sizes = [3, 128], strides = [1, 1]} : vector<8x128xf32> to vector<3x128xf32>
    %2 = vector.extract_strided_slice %0 {offsets = [3, 0], sizes = [3, 128], strides = [1, 1]} : vector<8x128xf32> to vector<3x128xf32>
    %3 = vector.extract_strided_slice %0 {offsets = [6, 0], sizes = [1, 128], strides = [1, 1]} : vector<8x128xf32> to vector<1x128xf32>
    %4 = vector.extract_strided_slice %0 {offsets = [7, 0], sizes = [1, 128], strides = [1, 1]} : vector<8x128xf32> to vector<1x128xf32>
    %5 = vector.broadcast %3 : vector<1x128xf32> to vector<3x128xf32>
    %6 = arith.mulf %5, %1 : vector<3x128xf32>
    %7 = vector.broadcast %4 : vector<1x128xf32> to vector<3x128xf32>
    %8 = arith.mulf %7, %2 : vector<3x128xf32>
    %9 = arith.addf %6, %8 : vector<3x128xf32>
    %c0_1 = arith.constant 0 : index
    %c0_2 = arith.constant 0 : index
    %10 = vector.load %arg2[%c0_1, %c0_2] : memref<3x128xf32, #tpu.memory_space<vmem>>, vector<3x128xf32>
    tpu.vector_store %arg2[%c0_1, %c0_2], %9 {strides = array<i32>} : memref<3x128xf32, #tpu.memory_space<vmem>>, vector<3x128xf32>,
    return
  }
  func.func @transform_0(%arg0: i32) -> (i32, i32) {
    %c0_i32 = arith.constant 0 : i32
    %c0_i32_0 = arith.constant 0 : i32
    return %c0_i32, %arg0 : i32, i32
  }
  func.func @transform_1(%arg0: i32) -> (i32, i32) {
    %c0_i32 = arith.constant 0 : i32
    %c0_i32_0 = arith.constant 0 : i32
    return %c0_i32, %arg0 : i32, i32
  }
}

</mosaic_0001>

<bundles_post_ra>
// kernel: forward_diffusion.1
= control target key start
LH: loop header
LB: loop body
LE: loop exit
PB: predicated region body
PF: predicated region fallthrough
CT: control target
= control target key end

     0   :  { %s38_s0 = inlined_call_operand.vmem [shape: f32[8,128], index: 0, kind: input, shape index: {}]   ;;  %s39_s1 = inlined_call_operand.vmem [shape: f32[3,128], index: 1, kind: output, shape index: {}]  }
   0x1   :  { %v8_v0 = vld [vmem:[%s38_s0] sm:$0xff] }
   0x2   :  { %v9_v1 = vperm.slane %v8_v0, 6  ;;  %v11_v2 = vperm.slane %v8_v0, 7 }
   0x4   :  { %v10_v3 = vmul.f32 %v9_v1, %v8_v0  ;;  %v12_v4 = vmul.f32 %v11_v2, %v8_v0 }
   0x6   :  { %v14_v5 = vrot.slane %v12_v4, 3 }
   0x8   :  { %v16_v6 = vadd.f32 %v14_v5, %v10_v3 }
   0xa   :  { %17 = vst [vmem:[%s39_s1] sm:$0x7] %v16_v6 }

</bundles_post_ra>
